<compile_context>
chip_gen: v7x
topology: tpu7x:2x2x1
jax: 0.10.0
libtpu: 0.0.40
codegen_flags: <defaults>
</compile_context>

<pallas_src>
import jax
import jax.numpy as jnp
from jax.experimental import pallas as pl
from jax.experimental.pallas import tpu as pltpu


def _round_up(x, m):
    return ((x + m - 1) // m) * m


def _compare_mlp_kernel(a_ref, b_ref, beta_ref, alpha_ref,
                        w1a_ref, w1b_ref, b1_ref, w2_ref, b2_ref,
                        va_ref, vb_ref):
    """One row tile: apply the shared MLP g to (A, beta) and (B, alpha).

    The feature concat is folded into two matmuls against the split first-layer
    weight W1 = [W1a ; W1b]:  cat([x, y], -1) @ W1 == x @ W1a + y @ W1b.
    """
    w1a = w1a_ref[...]
    w1b = w1b_ref[...]
    b1 = b1_ref[...].astype(jnp.float32)
    w2 = w2_ref[...]
    b2 = b2_ref[...].astype(jnp.float32)

    def mlp(x, y, o_ref):
        # Linear1 on the virtual concat (f32 MXU accumulation) + LeakyReLU(0.01).
        h = (jnp.dot(x, w1a, preferred_element_type=jnp.float32)
             + jnp.dot(y, w1b, preferred_element_type=jnp.float32)
             + b1)
        h = jnp.maximum(h, 0.01 * h)            # LeakyReLU, single VALU max
        # Linear2 + LeakyReLU; feed the MXU in the activations' native dtype
        # (for bf16 inputs this is a deliberate precision trade, f32 accumulate kept).
        z = (jnp.dot(h.astype(x.dtype), w2, preferred_element_type=jnp.float32)
             + b2)
        z = jnp.maximum(z, 0.01 * z)
        o_ref[...] = z.astype(o_ref.dtype)

    mlp(a_ref[...], beta_ref[...], va_ref)
    mlp(b_ref[...], alpha_ref[...], vb_ref)


def compare_forward(A, B, beta, alpha, params, *, tm_max=512):
    """A, B, beta, alpha: [batch, seq, input_dim] -> (V_A, V_B): [batch, seq, hidden].

    params = (w1, b1, w2, b2) with w1: [2*input_dim, H] (torch weight transposed),
    b1: [1, H] or [H], w2: [H, H], b2: [1, H] or [H].
    """
    w1, b1, w2, b2 = params
    batch, seq, d = A.shape
    H = w1.shape[1]
    assert w1.shape[0] == 2 * d, "w1 must have shape [2*input_dim, hidden]"

    N = batch * seq
    # Row tile: large (amortizes ~0.35us per-step overhead) but capped so there are
    # >= ~8 row tiles when N allows -> several pipelined steps per v7x TensorCore.
    tm = min(tm_max, _round_up(-(-N // 8), 8))
    tm = max(8, tm)
    N_pad = _round_up(N, tm)
    n_i = N_pad // tm

    def flat_rows(x):
        x = x.reshape(N, d)
        if N_pad != N:
            x = jnp.pad(x, ((0, N_pad - N), (0, 0)))
        return x

    A2, B2, be2, al2 = (flat_rows(t) for t in (A, B, beta, alpha))

    w1a = w1[:d]
    w1b = w1[d:]
    b1p = b1.reshape(1, H)
    b2p = b2.reshape(1, H)

    row_spec = pl.BlockSpec((tm, d), lambda i: (i, 0))
    out_spec = pl.BlockSpec((tm, H), lambda i: (i, 0))

    def resident(shape):
        return pl.BlockSpec(shape, lambda i: (0, 0))

    # VMEM budget: double-buffered 4 input tiles + 2 output tiles + resident weights.
    itemsize = jnp.dtype(A.dtype).itemsize
    lane = lambda c: _round_up(c, 128)
    sub = lambda r: _round_up(r, 8)
    in_tile = tm * lane(d) * itemsize
    out_tile = tm * lane(H) * itemsize
    w_bytes = (2 * sub(d) * lane(H) + sub(H) * lane(H) + 2 * 8 * lane(H)) * itemsize
    vmem_est = 2 * (4 * in_tile + 2 * out_tile + w_bytes)
    vmem_limit = int(min(max(2 * vmem_est, 8 << 20), 48 << 20))

    out_a, out_b = pl.pallas_call(
        _compare_mlp_kernel,
        out_shape=(jax.ShapeDtypeStruct((N_pad, H), A.dtype),
                   jax.ShapeDtypeStruct((N_pad, H), A.dtype)),
        grid_spec=pltpu.PrefetchScalarGridSpec(
            num_scalar_prefetch=0,
            grid=(n_i,),
            in_specs=[
                row_spec,            # A
                row_spec,            # B
                row_spec,            # beta
                row_spec,            # alpha
                resident((d, H)),    # W1a (fetched once, resident)
                resident((d, H)),    # W1b
                resident((1, H)),    # b1
                resident((H, H)),    # W2
                resident((1, H)),    # b2
            ],
            out_specs=[out_spec, out_spec],
        ),
        compiler_params=pltpu.CompilerParams(
            dimension_semantics=("parallel",),
            vmem_limit_bytes=vmem_limit,
        ),
    )(A2, B2, be2, al2, w1a, w1b, b1p, w2, b2p)

    if N_pad != N:
        out_a = out_a[:N]
        out_b = out_b[:N]
    V_A = out_a.reshape(batch, seq, H)
    V_B = out_b.reshape(batch, seq, H)
    return V_A, V_B


def init_params(key, input_dim, hidden_dim, dtype=jnp.float32):
    """Deterministic synthetic weights matching MLP(2*input_dim, hidden_dim) shapes."""
    k1, k2, k3, k4 = jax.random.split(key, 4)
    d_in = 2 * input_dim
    # stored as [in, out] (transposed vs. torch.nn.Linear.weight)
    w1 = jax.random.normal(k1, (d_in, hidden_dim), dtype) * (1.0 / jnp.sqrt(d_in))
    b1 = jax.random.normal(k2, (1, hidden_dim), dtype) * 0.01
    w2 = jax.random.normal(k3, (hidden_dim, hidden_dim), dtype) * (1.0 / jnp.sqrt(hidden_dim))
    b2 = jax.random.normal(k4, (1, hidden_dim), dtype) * 0.01
    return w1, b1, w2, b2


if __name__ == "__main__":
    batch, seq, input_dim, hidden_dim = 2, 8, 32, 32

    key = jax.random.PRNGKey(0)
    kA, kB, kbe, kal, kp = jax.random.split(key, 5)
    A = jax.random.normal(kA, (batch, seq, input_dim), jnp.float32)
    B = jax.random.normal(kB, (batch, seq, input_dim), jnp.float32)
    beta = jax.random.normal(kbe, (batch, seq, input_dim), jnp.float32)
    alpha = jax.random.normal(kal, (batch, seq, input_dim), jnp.float32)
    params = init_params(kp, input_dim, hidden_dim)

    V_A, V_B = compare_forward(A, B, beta, alpha, params)
    jax.block_until_ready((V_A, V_B))

    # sanity check against plain JAX reference (eval-mode dropout == identity)
    def ref_mlp(x):
        w1, b1, w2, b2 = params
        h = x @ w1 + b1
        h = jnp.where(h > 0, h, 0.01 * h)
        y = h @ w2 + b2
        return jnp.where(y > 0, y, 0.01 * y)

    refA = ref_mlp(jnp.concatenate([A, beta], -1).reshape(-1, 2 * input_dim)).reshape(V_A.shape)
    refB = ref_mlp(jnp.concatenate([B, alpha], -1).reshape(-1, 2 * input_dim)).reshape(V_B.shape)
    assert jnp.allclose(V_A, refA, atol=1e-3, rtol=1e-3), "V_A mismatch"
    assert jnp.allclose(V_B, refB, atol=1e-3, rtol=1e-3), "V_B mismatch"

    print("KERNEL_OK")
</pallas_src>

<mosaic_0001>
module attributes {stable_mosaic.version = 11 : i64} {
  func.func @_compare_mlp_kernel(%arg0: i32, %arg1: memref<8x32xf32, #tpu.memory_space<vmem>>, %arg2: memref<8x32xf32, #tpu.memory_space<vmem>>, %arg3: memref<8x32xf32, #tpu.memory_space<vmem>>, %arg4: memref<8x32xf32, #tpu.memory_space<vmem>>, %arg5: memref<32x32xf32, #tpu.memory_space<vmem>>, %arg6: memref<32x32xf32, #tpu.memory_space<vmem>>, %arg7: memref<1x32xf32, #tpu.memory_space<vmem>>, %arg8: memref<32x32xf32, #tpu.memory_space<vmem>>, %arg9: memref<1x32xf32, #tpu.memory_space<vmem>>, %arg10: memref<8x32xf32, #tpu.memory_space<vmem>>, %arg11: memref<8x32xf32, #tpu.memory_space<vmem>>) attributes {dimension_semantics = [#tpu.dimension_semantics<parallel>], iteration_bounds = array<i64: 2>, scalar_prefetch = 0 : i64, scratch_operands = 0 : i64, tpu.core_type = #tpu.core_type<tc>, window_params = [{transform_indices = @transform_0, window_bounds = array<i64: 8, 32>}, {transform_indices = @transform_1, window_bounds = array<i64: 8, 32>}, {transform_indices = @transform_2, window_bounds = array<i64: 8, 32>}, {transform_indices = @transform_3, window_bounds = array<i64: 8, 32>}, {pipeline_mode = #tpu.pipeline_mode<synchronous>, transform_indices = @transform_4, window_bounds = array<i64: 32, 32>}, {pipeline_mode = #tpu.pipeline_mode<synchronous>, transform_indices = @transform_5, window_bounds = array<i64: 32, 32>}, {pipeline_mode = #tpu.pipeline_mode<synchronous>, transform_indices = @transform_6, window_bounds = array<i64: 1, 32>}, {pipeline_mode = #tpu.pipeline_mode<synchronous>, transform_indices = @transform_7, window_bounds = array<i64: 32, 32>}, {pipeline_mode = #tpu.pipeline_mode<synchronous>, transform_indices = @transform_8, window_bounds = array<i64: 1, 32>}, {transform_indices = @transform_9, window_bounds = array<i64: 8, 32>}, {transform_indices = @transform_10, window_bounds = array<i64: 8, 32>}]} {
    %c0 = arith.constant 0 : index
    %c0_0 = arith.constant 0 : index
    %0 = vector.load %arg5[%c0, %c0_0] : memref<32x32xf32, #tpu.memory_space<vmem>>, vector<32x32xf32>
    %c0_1 = arith.constant 0 : index
    %c0_2 = arith.constant 0 : index
    %1 = vector.load %arg6[%c0_1, %c0_2] : memref<32x32xf32, #tpu.memory_space<vmem>>, vector<32x32xf32>
    %c0_3 = arith.constant 0 : index
    %c0_4 = arith.constant 0 : index
    %2 = vector.load %arg7[%c0_3, %c0_4] : memref<1x32xf32, #tpu.memory_space<vmem>>, vector<1x32xf32>
    %c0_5 = arith.constant 0 : index
    %c0_6 = arith.constant 0 : index
    %3 = vector.load %arg8[%c0_5, %c0_6] : memref<32x32xf32, #tpu.memory_space<vmem>>, vector<32x32xf32>
    %c0_7 = arith.constant 0 : index
    %c0_8 = arith.constant 0 : index
    %4 = vector.load %arg9[%c0_7, %c0_8] : memref<1x32xf32, #tpu.memory_space<vmem>>, vector<1x32xf32>
    %c0_9 = arith.constant 0 : index
    %c0_10 = arith.constant 0 : index
    %5 = vector.load %arg1[%c0_9, %c0_10] : memref<8x32xf32, #tpu.memory_space<vmem>>, vector<8x32xf32>
    %c0_11 = arith.constant 0 : index
    %c0_12 = arith.constant 0 : index
    %6 = vector.load %arg3[%c0_11, %c0_12] : memref<8x32xf32, #tpu.memory_space<vmem>>, vector<8x32xf32>
    %cst = arith.constant dense<0.000000e+00> : vector<8x32xf32>
    %7 = tpu.matmul %5, %0, %cst {dimension_numbers = #tpu.dot_dimension_numbers<[1], [0], [0], [1], [0, 0, 1, 1], [], []>} : vector<8x32xf32>, vector<32x32xf32>, vector<8x32xf32> -> vector<8x32xf32>
    %cst_13 = arith.constant dense<0.000000e+00> : vector<8x32xf32>
    %8 = tpu.matmul %6, %1, %cst_13 {dimension_numbers = #tpu.dot_dimension_numbers<[1], [0], [0], [1], [0, 0, 1, 1], [], []>} : vector<8x32xf32>, vector<32x32xf32>, vector<8x32xf32> -> vector<8x32xf32>
    %9 = arith.addf %7, %8 : vector<8x32xf32>
    %10 = vector.broadcast %2 : vector<1x32xf32> to vector<8x32xf32>
    %11 = arith.addf %9, %10 : vector<8x32xf32>
    %cst_14 = arith.constant 0.00999999977 : f32
    %12 = vector.broadcast %cst_14 : f32 to vector<8x32xf32>
    %13 = arith.mulf %12, %11 : vector<8x32xf32>
    %14 = arith.maximumf %11, %13 : vector<8x32xf32>
    %cst_15 = arith.constant dense<0.000000e+00> : vector<8x32xf32>
    %15 = tpu.matmul %14, %3, %cst_15 {dimension_numbers = #tpu.dot_dimension_numbers<[1], [0], [0], [1], [0, 0, 1, 1], [], []>} : vector<8x32xf32>, vector<32x32xf32>, vector<8x32xf32> -> vector<8x32xf32>
    %16 = vector.broadcast %4 : vector<1x32xf32> to vector<8x32xf32>
    %17 = arith.addf %15, %16 : vector<8x32xf32>
    %cst_16 = arith.constant 0.00999999977 : f32
    %18 = vector.broadcast %cst_16 : f32 to vector<8x32xf32>
    %19 = arith.mulf %18, %17 : vector<8x32xf32>
    %20 = arith.maximumf %17, %19 : vector<8x32xf32>
    %c0_17 = arith.constant 0 : index
    %c0_18 = arith.constant 0 : index
    %21 = vector.load %arg10[%c0_17, %c0_18] : memref<8x32xf32, #tpu.memory_space<vmem>>, vector<8x32xf32>
    tpu.vector_store %arg10[%c0_17, %c0_18], %20 {strides = array<i32>} : memref<8x32xf32, #tpu.memory_space<vmem>>, vector<8x32xf32>,
    %c0_19 = arith.constant 0 : index
    %c0_20 = arith.constant 0 : index
    %22 = vector.load %arg2[%c0_19, %c0_20] : memref<8x32xf32, #tpu.memory_space<vmem>>, vector<8x32xf32>
    %c0_21 = arith.constant 0 : index
    %c0_22 = arith.constant 0 : index
    %23 = vector.load %arg4[%c0_21, %c0_22] : memref<8x32xf32, #tpu.memory_space<vmem>>, vector<8x32xf32>
    %cst_23 = arith.constant dense<0.000000e+00> : vector<8x32xf32>
    %24 = tpu.matmul %22, %0, %cst_23 {dimension_numbers = #tpu.dot_dimension_numbers<[1], [0], [0], [1], [0, 0, 1, 1], [], []>} : vector<8x32xf32>, vector<32x32xf32>, vector<8x32xf32> -> vector<8x32xf32>
    %cst_24 = arith.constant dense<0.000000e+00> : vector<8x32xf32>
    %25 = tpu.matmul %23, %1, %cst_24 {dimension_numbers = #tpu.dot_dimension_numbers<[1], [0], [0], [1], [0, 0, 1, 1], [], []>} : vector<8x32xf32>, vector<32x32xf32>, vector<8x32xf32> -> vector<8x32xf32>
    %26 = arith.addf %24, %25 : vector<8x32xf32>
    %27 = vector.broadcast %2 : vector<1x32xf32> to vector<8x32xf32>
    %28 = arith.addf %26, %27 : vector<8x32xf32>
    %cst_25 = arith.constant 0.00999999977 : f32
    %29 = vector.broadcast %cst_25 : f32 to vector<8x32xf32>
    %30 = arith.mulf %29, %28 : vector<8x32xf32>
    %31 = arith.maximumf %28, %30 : vector<8x32xf32>
    %cst_26 = arith.constant dense<0.000000e+00> : vector<8x32xf32>
    %32 = tpu.matmul %31, %3, %cst_26 {dimension_numbers = #tpu.dot_dimension_numbers<[1], [0], [0], [1], [0, 0, 1, 1], [], []>} : vector<8x32xf32>, vector<32x32xf32>, vector<8x32xf32> -> vector<8x32xf32>
    %33 = vector.broadcast %4 : vector<1x32xf32> to vector<8x32xf32>
    %34 = arith.addf %32, %33 : vector<8x32xf32>
    %cst_27 = arith.constant 0.00999999977 : f32
    %35 = vector.broadcast %cst_27 : f32 to vector<8x32xf32>
    %36 = arith.mulf %35, %34 : vector<8x32xf32>
    %37 = arith.maximumf %34, %36 : vector<8x32xf32>
    %c0_28 = arith.constant 0 : index
    %c0_29 = arith.constant 0 : index
    %38 = vector.load %arg11[%c0_28, %c0_29] : memref<8x32xf32, #tpu.memory_space<vmem>>, vector<8x32xf32>
    tpu.vector_store %arg11[%c0_28, %c0_29], %37 {strides = array<i32>} : memref<8x32xf32, #tpu.memory_space<vmem>>, vector<8x32xf32>,
    return
  }
  func.func @transform_0(%arg0: i32) -> (i32, i32) {
    %c0_i32 = arith.constant 0 : i32
    %c0_i32_0 = arith.constant 0 : i32
    return %arg0, %c0_i32 : i32, i32
  }
  func.func @transform_1(%arg0: i32) -> (i32, i32) {
    %c0_i32 = arith.constant 0 : i32
    %c0_i32_0 = arith.constant 0 : i32
    return %arg0, %c0_i32 : i32, i32
  }
  func.func @transform_2(%arg0: i32) -> (i32, i32) {
    %c0_i32 = arith.constant 0 : i32
    %c0_i32_0 = arith.constant 0 : i32
    return %arg0, %c0_i32 : i32, i32
  }
  func.func @transform_3(%arg0: i32) -> (i32, i32) {
    %c0_i32 = arith.constant 0 : i32
    %c0_i32_0 = arith.constant 0 : i32
    return %arg0, %c0_i32 : i32, i32
  }
  func.func @transform_4(%arg0: i32) -> (i32, i32) {
    %c0_i32 = arith.constant 0 : i32
    %c0_i32_0 = arith.constant 0 : i32
    %c0_i32_1 = arith.constant 0 : i32
    return %c0_i32, %c0_i32_0 : i32, i32
  }
  func.func @transform_5(%arg0: i32) -> (i32, i32) {
    %c0_i32 = arith.constant 0 : i32
    %c0_i32_0 = arith.constant 0 : i32
    %c0_i32_1 = arith.constant 0 : i32
    return %c0_i32, %c0_i32_0 : i32, i32
  }
  func.func @transform_6(%arg0: i32) -> (i32, i32) {
    %c0_i32 = arith.constant 0 : i32
    %c0_i32_0 = arith.constant 0 : i32
    %c0_i32_1 = arith.constant 0 : i32
    return %c0_i32, %c0_i32_0 : i32, i32
  }
  func.func @transform_7(%arg0: i32) -> (i32, i32) {
    %c0_i32 = arith.constant 0 : i32
    %c0_i32_0 = arith.constant 0 : i32
    %c0_i32_1 = arith.constant 0 : i32
    return %c0_i32, %c0_i32_0 : i32, i32
  }
  func.func @transform_8(%arg0: i32) -> (i32, i32) {
    %c0_i32 = arith.constant 0 : i32
    %c0_i32_0 = arith.constant 0 : i32
    %c0_i32_1 = arith.constant 0 : i32
    return %c0_i32, %c0_i32_0 : i32, i32
  }
  func.func @transform_9(%arg0: i32) -> (i32, i32) {
    %c0_i32 = arith.constant 0 : i32
    %c0_i32_0 = arith.constant 0 : i32
    return %arg0, %c0_i32 : i32, i32
  }
  func.func @transform_10(%arg0: i32) -> (i32, i32) {
    %c0_i32 = arith.constant 0 : i32
    %c0_i32_0 = arith.constant 0 : i32
    return %arg0, %c0_i32 : i32, i32
  }
}

</mosaic_0001>

<bundles_post_ra>
// kernel: tpu_custom_call.1
= control target key start
LH: loop header
LB: loop body
LE: loop exit
PB: predicated region body
PF: predicated region fallthrough
CT: control target
= control target key end

     0   :  { %s2344_s0 = inlined_call_operand.hbm [shape: f32[16,32], index: 0, kind: input, shape index: {}]   ;;  %s2345_s1 = inlined_call_operand.hbm [shape: f32[16,32], index: 1, kind: input, shape index: {}]   ;;  %s2346_s2 = inlined_call_operand.hbm [shape: f32[16,32], index: 2, kind: input, shape index: {}]   ;;  %s2347_s3 = inlined_call_operand.hbm [shape: f32[16,32], index: 3, kind: input, shape index: {}]   ;;  %s2348_s4 = inlined_call_operand.hbm [shape: f32[32,32], index: 4, kind: input, shape index: {}]   ;;  %s2349_s5 = inlined_call_operand.hbm [shape: f32[32,32], index: 5, kind: input, shape index: {}]   ;;  %s2350_s6 = inlined_call_operand.vmem [shape: f32[1,32], index: 6, kind: input, shape index: {}]   ;;  %s2351_s7 = inlined_call_operand.hbm [shape: f32[32,32], index: 7, kind: input, shape index: {}]   ;;  %s2352_s8 = inlined_call_operand.vmem [shape: f32[1,32], index: 8, kind: input, shape index: {}]   ;;  %s2353_s9 = inlined_call_operand.hbm [shape: f32[16,32], index: 9, kind: output, shape index: {0}]   ;;  %s2354_s10 = inlined_call_operand.hbm [shape: f32[16,32], index: 10, kind: output, shape index: {1}]  }
   0x1   :  { %2374 = sst [smem:[#allocation28_spill]] %s2345_s1 }
   0x2   :  { %2375 = sst [smem:[#allocation29_spill]] %s2348_s4 }
   0x3   :  { %2376 = sst [smem:[#allocation30_spill]] %s2349_s5 }
   0x4   :  { %2377 = sst [smem:[#allocation31_spill]] %s2353_s9 }
   0x5   :  { %2378 = sst [smem:[#allocation32_spill]] %s2354_s10 }
   0x6   :  { %16 = vsyncpa [#allocation3], 0 }
   0x7   :  { %18 = vsyncpa [#allocation3 + $0x1], 0 }
   0x8   :  { %19 = vsyncpa [#allocation6], 0 }
   0x9   :  { %21 = vsyncpa [#allocation6 + $0x1], 0 }
   0xa   :  { %22 = vsyncpa [#allocation9], 0 }
   0xb   :  { %24 = vsyncpa [#allocation9 + $0x1], 0 }
   0xc   :  { %25 = vsyncpa [#allocation12], 0 }
   0xd   :  { %26 = vsyncpa [#allocation4], 0 }
   0xe   :  { %28 = vsyncpa [#allocation4 + $0x1], 0 }
   0xf   :  { %29 = vsyncpa [#allocation16], 0 }
  0x10   :  { %31 = vsyncpa [#allocation16 + $0x1], 0  ;;  %s1907_s13 = smov 0   ;;  %s1909_s14 = smov 0  }
  0x11   :  { %s1911_s15 = smov 0   ;;  %s1913_s16 = smov 0  }
  0x12 LB: > { %2379 = sst [smem:[#allocation24_spill]] %s1824_s13  ;;  %s1928_s17 = sadd.s32 4294967295, %s1836_s16   ;;  %s1836_s16 = sphi %s1913_s16, %s2417_s16   ;;  %s1832_s15 = sphi %s1911_s15, %s2421_s15   ;;  %s1828_s14 = sphi %s1909_s14, %s2420_s14   ;;  %s1824_s13 = sphi %s1907_s13, %s2419_s13  }
  0x13   : > { %s1246_s18 = sadd.s32 4294967294, %s1836_s16   ;;  %p57_p0 = scmp.ne.s32.totalorder %s1828_s14, %s1824_s13 }
  0x14   : > { %p2355_p1 = scmp.eq.s32.totalorder %s1928_s17, 0  ;;  %p270_p3 = scmp.eq.s32.totalorder %s1246_s18, 1 }
  0x15   : > { %p1247_p5 = scmp.ge.s32.totalorder %s1836_s16, 1  ;;  %p303_p7 = scmp.lt.s32.totalorder %s1836_s16, 3 }
  0x16   : > { %p1937_p4 = por %p2355_p1, %p57_p0  ;;  %p1942_p6 = por %p270_p3, %p57_p0 }
  0x17   : > { %p1947_p8 = pnand %p1247_p5, %p303_p7  ;;  %s1838_s22 = smov [#allocation10]  }
  0x18   : > { %s2380_s19 = scalar_select %p1937_p4, 1, 0 }
  0x19   : > { %s2381_s20 = scalar_select %p1942_p6, 1, 0 }
  0x1a   : > { %s2383_s21 = scalar_select %p1947_p8, 1, 0 }
  0x1b   : > { %2382 = sst [smem:[#allocation25_spill]] %s2381_s20  ;;  %s315_s23 = sshll.u32 %s1838_s22, 4  ;;  %s1951_s23 = int_to_ptr.vmem [resolvable:$true] %s315_s23 }
  0x1c   : > { %p1440_p9 = pneg %p1947_p8  ;;  %s1839_s25 = smov [#allocation11]  }
  0x1d   : > { %s328_s26 = sshll.u32 %s1839_s25, 4  ;;  %s2385_s4 = sld [smem:[#allocation29_spill]]  ;;  %s1962_s26 = int_to_ptr.vmem [resolvable:$true] %s328_s26 }
  0x1e   : > { %p1958_p11 = pnand %p1440_p9, %p2355_p1 }
  0x20   : > { %s2384_s24 = scalar_select %p1958_p11, 1, 0 }
  0x21   : > { %p1972_p13 = pneg %p1958_p11 }
  0x23   : > { %s1518_s29 = scalar_lea.hbm %s2385_s4, 512 }
  0x24   : > { %p1519_p12 = scmp.ne.s32.totalorder %s2385_s4, %s1518_s29  ;;  %p1525_p5 = scmp.lt.u32.totalorder %s1518_s29, %s2385_s4 }
  0x25   : > { %s2386_s12 = scalar_select %p1972_p13, 1, 0 }
  0x26   : > { %p1521_p0 = pnand %p1972_p13, %p1519_p12 }
  0x28   : > { %p1522_p3 = pneg %p1521_p0 }
  0x2a   : > { %p1527_p7 = pnand %p1525_p5, %p1522_p3 }
  0x2c   : > { %1530 = shalt.err (!%p1527_p7)
}
  0x2d   : > { %s1531_s25 = scalar_lea.vmem %s1951_s23, 512  ;;  %p1539_p2 = scmp.lt.s32.totalorder %s1951_s23, %s1951_s23 }
  0x2e   : > { %p1532_p9 = scmp.ne.s32.totalorder %s1951_s23, %s1531_s25  ;;  %p1540_p6 = scmp.lt.s32.totalorder %s1531_s25, %s1531_s25 }
  0x30   : > { %p1534_p10 = pnand %p1532_p9, %p1972_p13  ;;  %p1541_p12 = por %p1540_p6, %p1539_p2 }
  0x32   : > { %p1535_p1 = pneg %p1534_p10 }
  0x34   : > { %p1542_p0 = pnand %p1541_p12, %p1535_p1 }
  0x36   : > { %1545 = shalt.err (!%p1542_p0)
}
  0x37   : > { %s2360_s27 = smov 128   ;;  %s2361_s28 = smov 8  }
  0x38   : > { %1443 = dma.hbm_to_vmem [thread:$0]  (!%p1958_p11), %s2385_s4, 512, %s1951_s23, [#allocation9], %s2360_s27, %s2360_s27, %s2361_s28  }
  0x39   : > { %s2387_s5 = sld [smem:[#allocation30_spill]] }
  0x3f   : > { %s1546_s22 = scalar_lea.hbm %s2387_s5, 512 }
  0x40   : > { %p1547_p1 = scmp.ne.s32.totalorder %s2387_s5, %s1546_s22  ;;  %p1553_p10 = scmp.lt.u32.totalorder %s1546_s22, %s2387_s5 }
  0x42   : > { %p1549_p2 = pnand %p1547_p1, %p1972_p13 }
  0x44   : > { %p1550_p6 = pneg %p1549_p2 }
  0x46   : > { %p1555_p3 = pnand %p1553_p10, %p1550_p6 }
  0x48   : > { %1558 = shalt.err (!%p1555_p3)
}
  0x49   : > { %s1559_s23 = scalar_lea.vmem %s1962_s26, 512  ;;  %p1567_p12 = scmp.lt.s32.totalorder %s1962_s26, %s1962_s26 }
  0x4a   : > { %p1560_p5 = scmp.ne.s32.totalorder %s1962_s26, %s1559_s23  ;;  %p1568_p0 = scmp.lt.s32.totalorder %s1559_s23, %s1559_s23 }
  0x4c   : > { %p1562_p7 = pnand %p1560_p5, %p1972_p13  ;;  %p1569_p1 = por %p1568_p0, %p1567_p12 }
  0x4e   : > { %p1563_p9 = pneg %p1562_p7 }
  0x50   : > { %p1570_p2 = pnand %p1569_p1, %p1563_p9 }
  0x52   : > { %1573 = shalt.err (!%p1570_p2)
}
  0x53   : > { %1446 = dma.hbm_to_vmem [thread:$0]  (!%p1958_p11), %s2387_s5, 512, %s1962_s26, [#allocation12], %s2360_s27, %s2360_s27, %s2361_s28  }
  0x54   : > { %s2023_s20 = sadd.s32 1, %s1836_s16   ;;  %s44_s29 = sadd.s32 1, %s1832_s15 }
  0x55   : > { %2388 = sst [smem:[#allocation26_spill]] %s2023_s20  ;;  %s41_s30 = ssub.s32 %s1836_s16, %s2023_s20 }
  0x56   : > { %p51_p6 = scmp.ne.s32.totalorder %s1832_s15, %s1828_s14  ;;  %p42_p10 = scmp.eq.s32.totalorder %s41_s30, 0 }
  0x57   : > { %p52_p3 = scmp.eq.s32.totalorder %s1836_s16, 0  ;;  %p2389_p5 = scmp.eq.s32.totalorder %s1928_s17, 1 }
  0x58   : > { %p1473_p9 = scmp.lt.s32.totalorder %s1836_s16, 2  ;;  %s2359_s22 = sand.u32 1, %s1832_s15  }
  0x59   : > { %p2033_p7 = por %p2389_p5, %p51_p6  ;;  %p53_p12 = por %p52_p3, %p51_p6 }
  0x5a   : > { %s2039_s18 = scalar_select %p42_p10, %s1832_s15, %s44_s29  }
  0x5b   : > { %s2390_s11 = scalar_select %p2033_p7, 1, 0 }
  0x5c   : > { %2391 = sst [smem:[#allocation27_spill]] %s2039_s18  ;;  %s2044_s26 = sshll.u32 %s2359_s22, 3 }
  0x5d   : > { %s2047_s25 = sshll.u32 %s1836_s16, 7  ;;  %p2049_p0 = pnand %p1473_p9, %p53_p12 }
  0x5e   : > { %s2366_s10 = sand.u32 1, %s1836_s16   ;;  %s2393_s1 = sld [smem:[#allocation28_spill]] }
  0x5f   : > { %s2392_s23 = scalar_select %p2049_p0, 1, 0 }
  0x60   : > { %s383_s22 = scalar_lea.vmem [#allocation5], %s2044_s26  ;;  %s2065_s28 = scalar_lea.sflag [#allocation6], %s2366_s10 }
  0x61   : > { %s390_s27 = sshll.u32 %s383_s22, 4  ;;  %p2071_p2 = pneg %p2049_p0  ;;  %s2061_s27 = int_to_ptr.vmem [resolvable:$true] %s390_s27 }
  0x64   : > { %s2058_s29 = scalar_lea.hbm %s2393_s1, %s2047_s25  ;;  %s1579_s22 = scalar_lea.hbm %s2393_s1, 256 }
  0x65   : > { %s1574_s4 = scalar_lea.hbm %s2058_s29, 128  ;;  %p1580_p3 = scmp.lt.u32.totalorder %s2058_s29, %s2393_s1 }
  0x66   : > { %p1575_p1 = scmp.ne.s32.totalorder %s2058_s29, %s1574_s4  ;;  %p1581_p5 = scmp.lt.u32.totalorder %s1579_s22, %s1574_s4 }
  0x67   : > { %p1583_p12 = scmp.lt.u32.totalorder %s1574_s4, %s2058_s29 }
  0x68   : > { %p1577_p6 = pnand %p2071_p2, %p1575_p1  ;;  %p1582_p9 = por %p1581_p5, %p1580_p3 }
  0x6a   : > { %p1578_p10 = pneg %p1577_p6  ;;  %p1584_p7 = por %p1583_p12, %p1582_p9 }
  0x6c   : > { %p1585_p4 = pnand %p1584_p7, %p1578_p10 }
  0x6e   : > { %1588 = shalt.err (!%p1585_p4)
}
  0x6f   : > { %s1589_s10 = scalar_lea.vmem %s2061_s27, 128  ;;  %s1842_s13 = smov [#allocation5]  }
  0x70   : > { %p1590_p1 = scmp.ne.s32.totalorder %s2061_s27, %s1589_s10  ;;  %s1594_s30 = sshll.u32 %s1842_s13, 4  ;;  %s1595_s30 = int_to_ptr.vmem [resolvable:$false] %s1594_s30 }
  0x71   : > { %s1596_s20 = scalar_lea.vmem %s1595_s30, 256  ;;  %p1597_p11 = scmp.lt.s32.totalorder %s2061_s27, %s1595_s30 }
  0x72   : > { %p1592_p6 = pnand %p1590_p1, %p2071_p2  ;;  %p1598_p13 = scmp.lt.s32.totalorder %s1596_s20, %s1589_s10 }
  0x74   : > { %p1593_p8 = pneg %p1592_p6  ;;  %p1599_p3 = por %p1598_p13, %p1597_p11 }
  0x76   : > { %p1600_p5 = pnand %p1599_p3, %p1593_p8 }
  0x78   : > { %1603 = shalt.err (!%p1600_p5)
}
  0x79   : > { %1456 = dma.hbm_to_vmem [thread:$0]  (!%p2049_p0), %s2058_s29, 128, %s2061_s27, %s2065_s28  }
  0x7a   : > { %s1843_s4 = smov [#allocation13]   ;;  %s1604_s13 = scalar_lea.hbm %s2351_s7, 512 }
  0x7b   : > { %s344_s18 = sshll.u32 %s1843_s4, 4  ;;  %p1605_p4 = scmp.ne.s32.totalorder %s2351_s7, %s1604_s13  ;;  %s345_s18 = int_to_ptr.vmem [resolvable:$true] %s344_s18 }
  0x7c   : > { %p2395_p8 = scmp.ne.s32.totalorder %s2386_s12, 0  ;;  %p1611_p7 = scmp.lt.u32.totalorder %s1604_s13, %s2351_s7 }
  0x7e   : > { %p1607_p11 = pnand %p1605_p4, %p2395_p8 }
  0x80   : > { %p1608_p13 = pneg %p1607_p11 }
  0x82   : > { %p1613_p10 = pnand %p1611_p7, %p1608_p13 }
  0x84   : > { %1616 = shalt.err (!%p1613_p10)
}
  0x85   : > { %s1617_s27 = scalar_lea.vmem %s345_s18, 512  ;;  %p1625_p6 = scmp.lt.s32.totalorder %s345_s18, %s345_s18 }
  0x86   : > { %p1618_p9 = scmp.ne.s32.totalorder %s345_s18, %s1617_s27  ;;  %p1626_p3 = scmp.lt.s32.totalorder %s1617_s27, %s1617_s27 }
  0x88   : > { %p1620_p12 = pnand %p1618_p9, %p2395_p8  ;;  %p1627_p5 = por %p1626_p3, %p1625_p6 }
  0x8a   : > { %p1621_p1 = pneg %p1620_p12 }
  0x8c   : > { %p1628_p0 = pnand %p1627_p5, %p1621_p1 }
  0x8e   : > { %1631 = shalt.err (!%p1628_p0)
}
  0x8f   : > { %p2396_p4 = scmp.ne.s32.totalorder %s2384_s24, 0  ;;  %s2397_s1 = smov 8  }
  0x90   : > { %s2398_s9 = smov 128   ;;  %s2120_s13 = scalar_lea.hbm %s2344_s0, %s2047_s25 }
  0x91   : > { %1449 = dma.hbm_to_vmem [thread:$0]  (!%p2396_p4), %s2351_s7, 512, %s345_s18, [#allocation12], %s2398_s9, %s2398_s9, %s2397_s1  }
  0x92   : > { %s365_s24 = scalar_lea.vmem [#allocation2], %s2044_s26  ;;  %s2399_s10 = sand.u32 1, %s1832_s15  }
  0x93   : > { %s372_s30 = sshll.u32 %s365_s24, 4  ;;  %s362_s20 = scalar_lea.sflag [#allocation3], %s2399_s10  ;;  %s373_s30 = int_to_ptr.vmem [resolvable:$true] %s372_s30 }
  0x94   : > { %s1632_s27 = scalar_lea.hbm %s2120_s13, 128  ;;  %s1637_s9 = scalar_lea.hbm %s2344_s0, 256 }
  0x95   : > { %p1633_p0 = scmp.ne.s32.totalorder %s2120_s13, %s1632_s27  ;;  %p1638_p13 = scmp.lt.u32.totalorder %s2120_s13, %s2344_s0 }
  0x96   : > { %p1639_p7 = scmp.lt.u32.totalorder %s1637_s9, %s1632_s27  ;;  %p1641_p9 = scmp.lt.u32.totalorder %s1632_s27, %s2120_s13 }
  0x97   : > { %p1635_p8 = pnand %p1633_p0, %p2071_p2 }
  0x98   : > { %p1640_p10 = por %p1639_p7, %p1638_p13 }
  0x99   : > { %p1636_p11 = pneg %p1635_p8 }
  0x9a   : > { %p1642_p12 = por %p1641_p9, %p1640_p10 }
  0x9c   : > { %p1643_p1 = pnand %p1642_p12, %p1636_p11 }
  0x9e   : > { %1646 = shalt.err (!%p1643_p1)
}
  0x9f   : > { %s1647_s12 = scalar_lea.vmem %s373_s30, 128  ;;  %s1844_s22 = smov [#allocation2]  }
  0xa0   : > { %p1648_p6 = scmp.ne.s32.totalorder %s373_s30, %s1647_s12  ;;  %s1652_s24 = sshll.u32 %s1844_s22, 4  ;;  %s1653_s24 = int_to_ptr.vmem [resolvable:$false] %s1652_s24 }
  0xa1   : > { %s1654_s10 = scalar_lea.vmem %s1653_s24, 256  ;;  %p1655_p4 = scmp.lt.s32.totalorder %s373_s30, %s1653_s24 }
  0xa2   : > { %p1650_p3 = pnand %p1648_p6, %p2071_p2  ;;  %p1656_p0 = scmp.lt.s32.totalorder %s1654_s10, %s1647_s12 }
  0xa4   : > { %p1651_p5 = pneg %p1650_p3  ;;  %p1657_p8 = por %p1656_p0, %p1655_p4 }
  0xa6   : > { %p1658_p7 = pnand %p1657_p8, %p1651_p5 }
  0xa8   : > { %1661 = shalt.err (!%p1658_p7)
}
  0xa9   : > { %p2400_p13 = scmp.ne.s32.totalorder %s2392_s23, 0  ;;  %s2146_s1 = scalar_lea.hbm %s2346_s2, %s2047_s25 }
  0xaa   : > { %s401_s9 = scalar_lea.vmem [#allocation7], %s2044_s26  ;;  %s1662_s4 = scalar_lea.hbm %s2146_s1, 128 }
  0xab   : > { %1453 = dma.hbm_to_vmem [thread:$0]  (!%p2400_p13), %s2120_s13, 128, %s373_s30, %s362_s20  }
  0xac   : > { %s408_s29 = sshll.u32 %s401_s9, 4  ;;  %p1663_p11 = scmp.ne.s32.totalorder %s2146_s1, %s1662_s4  ;;  %s409_s29 = int_to_ptr.vmem [resolvable:$true] %s408_s29 }
  0xad   : > { %s1667_s13 = scalar_lea.hbm %s2346_s2, 256  ;;  %p1668_p12 = scmp.lt.u32.totalorder %s2146_s1, %s2346_s2 }
  0xae   : > { %p1665_p10 = pnand %p1663_p11, %p2071_p2  ;;  %p1669_p1 = scmp.lt.u32.totalorder %s1667_s13, %s1662_s4 }
  0xaf   : > { %p1671_p3 = scmp.lt.u32.totalorder %s1662_s4, %s2146_s1 }
  0xb0   : > { %p1666_p9 = pneg %p1665_p10  ;;  %p1670_p6 = por %p1669_p1, %p1668_p12 }
  0xb2   : > { %p1672_p5 = por %p1671_p3, %p1670_p6 }
  0xb4   : > { %p1673_p4 = pnand %p1672_p5, %p1666_p9 }
  0xb6   : > { %1676 = shalt.err (!%p1673_p4)
}
  0xb7   : > { %s1677_s24 = scalar_lea.vmem %s409_s29, 128  ;;  %s1845_s10 = smov [#allocation7]  }
  0xb8   : > { %p1678_p0 = scmp.ne.s32.totalorder %s409_s29, %s1677_s24  ;;  %s1682_s27 = sshll.u32 %s1845_s10, 4  ;;  %s1683_s27 = int_to_ptr.vmem [resolvable:$false] %s1682_s27 }
  0xb9   : > { %s1684_s18 = scalar_lea.vmem %s1683_s27, 256  ;;  %p1685_p11 = scmp.lt.s32.totalorder %s409_s29, %s1683_s27 }
  0xba   : > { %p1680_p8 = pnand %p1678_p0, %p2071_p2  ;;  %p1686_p10 = scmp.lt.s32.totalorder %s1684_s18, %s1677_s24 }
  0xbc   : > { %p1681_p7 = pneg %p1680_p8  ;;  %p1687_p13 = por %p1686_p10, %p1685_p11 }
  0xbe   : > { %p1688_p1 = pnand %p1687_p13, %p1681_p7 }
  0xc0   : > { %1691 = shalt.err (!%p1688_p1)
}
  0xc1   : > { %p2401_p12 = scmp.ne.s32.totalorder %s2392_s23, 0  ;;  %s2171_s12 = scalar_lea.hbm %s2347_s3, %s2047_s25 }
  0xc2   : > { %s419_s22 = scalar_lea.vmem [#allocation8], %s2044_s26  ;;  %s2402_s30 = sand.u32 1, %s1836_s16  }
  0xc3   : > { %1459 = dma.hbm_to_vmem [thread:$0]  (!%p2401_p12), %s2146_s1, 128, %s409_s29, %s2065_s28  }
  0xc4   : > { %s426_s13 = sshll.u32 %s419_s22, 4  ;;  %s416_s20 = scalar_lea.sflag [#allocation9], %s2402_s30  ;;  %s427_s13 = int_to_ptr.vmem [resolvable:$true] %s426_s13 }
  0xc5   : > { %s1692_s24 = scalar_lea.hbm %s2171_s12, 128  ;;  %s1697_s29 = scalar_lea.hbm %s2347_s3, 256 }
  0xc6   : > { %p1693_p13 = scmp.ne.s32.totalorder %s2171_s12, %s1692_s24  ;;  %p1698_p3 = scmp.lt.u32.totalorder %s2171_s12, %s2347_s3 }
  0xc7   : > { %p1699_p5 = scmp.lt.u32.totalorder %s1697_s29, %s1692_s24  ;;  %p1701_p0 = scmp.lt.u32.totalorder %s1692_s24, %s2171_s12 }
  0xc8   : > { %p1695_p9 = pnand %p1693_p13, %p2071_p2 }
  0xc9   : > { %p1700_p4 = por %p1699_p5, %p1698_p3 }
  0xca   : > { %p1696_p6 = pneg %p1695_p9 }
  0xcb   : > { %p1702_p8 = por %p1701_p0, %p1700_p4 }
  0xcd   : > { %p1703_p7 = pnand %p1702_p8, %p1696_p6 }
  0xcf   : > { %1706 = shalt.err (!%p1703_p7)
}
  0xd0   : > { %s1707_s26 = scalar_lea.vmem %s427_s13, 128  ;;  %s1846_s27 = smov [#allocation8]  }
  0xd1   : > { %p1708_p11 = scmp.ne.s32.totalorder %s427_s13, %s1707_s26  ;;  %s1712_s18 = sshll.u32 %s1846_s27, 4  ;;  %s1713_s18 = int_to_ptr.vmem [resolvable:$false] %s1712_s18 }
  0xd2   : > { %s1714_s9 = scalar_lea.vmem %s1713_s18, 256  ;;  %p1715_p13 = scmp.lt.s32.totalorder %s427_s13, %s1713_s18 }
  0xd3   : > { %p1710_p10 = pnand %p1708_p11, %p2071_p2  ;;  %p1716_p9 = scmp.lt.s32.totalorder %s1714_s9, %s1707_s26 }
  0xd5   : > { %p1711_p1 = pneg %p1710_p10  ;;  %p1717_p12 = por %p1716_p9, %p1715_p13 }
  0xd7   : > { %p1718_p3 = pnand %p1717_p12, %p1711_p1 }
  0xd9   : > { %1721 = shalt.err (!%p1718_p3)
}
  0xda   : > { %p2403_p5 = scmp.ne.s32.totalorder %s2392_s23, 0  ;;  %p2404_p6 = scmp.ne.s32.totalorder %s2383_s21, 0 }
  0xdb   : > { %s2196_s5 = sand.u32 (!%p2404_p6), 1, %s1828_s14   ;;  %p2405_p2 = scmp.ne.s32.totalorder (!%p2404_p6), %s2380_s19, 0 }
  0xdc   : > { %1462 = dma.hbm_to_vmem [thread:$0]  (!%p2403_p5), %s2171_s12, 128, %s427_s13, %s416_s20  }
  0xdd   : > { %435 = sbr.rel (%p2404_p6) target bundleno = 933 (0x3a5), region = 56  ;;  %s2199_s4 = sshll.u32 (!%p2404_p6), %s2196_s5, 3 }
  0xde   : > { %s438_s22 = scalar_lea.sflag (!%p2404_p6), [#allocation3], %s2196_s5  ;;  %s441_s30 = scalar_lea.vmem (!%p2404_p6), [#allocation2], %s2199_s4 }
  0xe4   : > { %1795 = dma.done.wait (%p2405_p2), %s438_s22, 128  }
  0xe5   : > { %1797 = vsyncadd (%p2405_p2), %s438_s22, 4294967168  ;;  %s446_s21 = sand.u32 1, %s1928_s17   ;;  %s450_s12 = scalar_lea.vmem [#allocation5], %s2199_s4 }
  0xe6   : > { %s447_s23 = scalar_lea.sflag [#allocation6], %s446_s21 }
  0xe7   : > { %1799 = dma.done.wait (%p2405_p2), %s447_s23, 256  }
  0xe8   : > { %1801 = vsyncadd (%p2405_p2), %s447_s23, 4294967040  ;;  %s459_s13 = scalar_lea.vmem [#allocation7], %s2199_s4  ;;  %s465_s20 = scalar_lea.sflag [#allocation9], %s446_s21 }
  0xe9   : > { %s468_s24 = scalar_lea.vmem [#allocation8], %s2199_s4 }
  0xea   : > { %1803 = dma.done.wait (%p2405_p2), %s465_s20, 128  }
  0xeb   : > { %1805 = vsyncadd (%p2405_p2), %s465_s20, 4294967168  ;;  %p2406_p12 = scmp.eq.s32.totalorder %s1928_s17, 0 }
  0xed   : > { %1807 = dma.done.wait (%p2406_p12), [#allocation9], 512   ;;  %p2407_p4 = pmov %p2406_p12 }
  0xef   : > { %1809 = vsyncadd (%p2407_p4), [#allocation9], 4294966784  ;;  %p2408_p0 = pmov %p2407_p4 }
  0xf1   : > { %1811 = dma.done.wait (%p2408_p0), [#allocation12], 1024   ;;  %p2409_p8 = pmov %p2408_p0 }
  0xf2   : > { %v1847_v0 = vmov 0.0|0.0   ;;  %vm1848_vm0 = vmmov 0   ;;  %v1849_v1 = vmov 0.0   ;;  %v541_v2 = vld [vmem:[#allocation11] sm:$0xff]  ;;  %v542_v3 = vld [vmem:[#allocation11 + $0x8] sm:$0xff]  ;;  %v543_v7 = vld [vmem:[#allocation11 + $0x10] sm:$0xff] }
  0xf3   : > { %1813 = vsyncadd (%p2409_p8), [#allocation12], 4294966272  ;;  %1380 = vmatprep.subr.bf16.mxu0 %v1847_v0  ;;  %1386 = vmatprep.subr.bf16.mxu1 %v1847_v0  ;;  %v537_v4 = vld [vmem:[#allocation10] sm:$0xff]  ;;  %v1381_v5 = vpack.c.bf16 %v542_v3, %v541_v2  ;;  %v538_v6 = vld [vmem:[#allocation10 + $0x8] sm:$0xff]  ;;  %vm553_vm1 = vcmask 261120   ;;  %s529_s25 = scalar_lea.vmem [#allocation14], %s2199_s4 }
  0xf4   : > { %1322 = vmatprep.mubr.msk.f32.mxu0 %vm1848_vm0, %v1849_v1  ;;  %1333 = vmatprep.mubr.msk.f32.mxu1 %vm1848_vm0, %v1849_v1  ;;  %v544_v8 = vld [vmem:[#allocation11 + $0x18] sm:$0xff]  ;;  %v1387_v9 = vpack.c.bf16 %v538_v6, %v537_v4  ;;  %v539_v10 = vld [vmem:[#allocation10 + $0x10] sm:$0xff]  ;;  %v552_v14 = vld [vmem:[%s459_s13] sm:$0xff]  ;;  %s1280_s10 = sshll.u32 %s1928_s17, 7  ;;  %s2410_s18 = sld [smem:[#allocation31_spill]] }
  0xf5   : > { %v540_v11 = vld [vmem:[#allocation10 + $0x18] sm:$0xff]  ;;  %1382 = vmatpush3.bf16.msra.mxu0 %v1381_v5  ;;  %v1384_v12 = vpack.c.bf16 %v544_v8, %v543_v7  ;;  %v551_v15 = vld [vmem:[%s441_s30] sm:$0xff]  ;;  %v548_v19 = vld [vmem:[#allocation13 + $0x10] sm:$0xff]  ;;  %s1037_s22 = sshll.u32 %s529_s25, 4  ;;  %s1019_s30 = scalar_lea.sflag [#allocation4], %s2196_s5  ;;  %s1038_s22 = int_to_ptr.vmem [resolvable:$true] %s1037_s22 }
  0xf6   : > { %1388 = vmatpush3.bf16.msra.mxu1 %v1387_v9  ;;  %1383 = vmatprep.subr.bf16.mxu0 %v1847_v0  ;;  %v1390_v13 = vpack.c.bf16 %v540_v11, %v539_v10  ;;  %v546_v16 = vld [vmem:[#allocation13] sm:$0xff]  ;;  %v547_v17 = vld [vmem:[#allocation13 + $0x8] sm:$0xff]  ;;  %v549_v20 = vld [vmem:[#allocation13 + $0x18] sm:$0xff]  ;;  %s1722_s21 = scalar_lea.vmem %s1038_s22, 128  ;;  %p2411_p11 = scmp.ne.s32.totalorder %s2390_s11, 0 }
  0xf7   : > { %1389 = vmatprep.subr.bf16.mxu1 %v1847_v0  ;;  %v1393_v18 = vpack.c.bf16 %v547_v17, %v546_v16  ;;  %v1396_v21 = vpack.c.bf16 %v549_v20, %v548_v19  ;;  %v792_v22 = vld [vmem:[%s468_s24] sm:$0xff]  ;;  %v1272_v24 = vld [vmem:[%s2350_s6] ss:$0 sm:$0xff]  ;;  %p1723_p7 = scmp.ne.s32.totalorder %s1038_s22, %s1722_s21  ;;  %s1850_s23 = smov [#allocation14]  }
  0xf8   : > { %v791_v32 = vld [vmem:[%s450_s12] sm:$0xff]  ;;  %v1273_v35 = vld [vmem:[%s2352_s8] ss:$0 sm:$0xff]  ;;  %s1726_s12 = sshll.u32 %s1850_s23, 4  ;;  %s1727_s12 = int_to_ptr.vmem [resolvable:$false] %s1726_s12 }
  0xf9   : > { %1385 = vmatpush3.bf16.msra.mxu0 %v1384_v12  ;;  %p1724_p10 = pnand %p1723_p7, %p2411_p11  ;;  %s1728_s13 = scalar_lea.vmem %s1727_s12, 256 }
  0xfa   : > { %1391 = vmatpush3.bf16.msra.mxu1 %v1390_v13  ;;  %1392 = vmatprep.subr.bf16.mxu0 %v1847_v0  ;;  %s2273_s9 = scalar_lea.hbm %s2410_s18, %s1280_s10  ;;  %p1729_p13 = scmp.lt.s32.totalorder %s1038_s22, %s1727_s12 }
  0xfb   : > { %1398 = vmatprep.subr.bf16.mxu1 %v1847_v0  ;;  %p1725_p1 = pneg %p1724_p10  ;;  %p1730_p9 = scmp.lt.s32.totalorder %s1728_s13, %s1722_s21 }
  0xfc   : > { %1323 = vmatmul.mubr.msk.f32.vlgmr.msra.gmra.mrb[0].mxu0 %vm553_vm1, %v552_v14 }
  0xfd   : > { %1334 = vmatmul.mubr.msk.f32.vlgmr.msra.gmra.mrb[0].mxu1 %vm553_vm1, %v551_v15  ;;  %1344 = vmatprep.mubr.msk.f32.mxu0 %vm1848_vm0, %v1849_v1  ;;  %p1731_p3 = por %p1730_p9, %p1729_p13 }
  0xfe   : > { %1400 = vmatpush3.bf16.msra.mxu1 %v1381_v5  ;;  %1355 = vmatprep.mubr.msk.f32.mxu1 %vm1848_vm0, %v1849_v1 }
  0xff   : > { %1401 = vmatprep.subr.bf16.mxu1 %v1847_v0  ;;  %1394 = vmatpush3.bf16.msra.mxu0 %v1393_v18  ;;  %p1732_p5 = pnand %p1731_p3, %p1725_p1 }
 0x100   : > { %1395 = vmatprep.subr.bf16.mxu0 %v1847_v0 }
 0x102   : > { %1403 = vmatpush3.bf16.msra.mxu1 %v1384_v12 }
 0x103   : > { %1410 = vmatprep.subr.bf16.mxu1 %v1847_v0  ;;  %1397 = vmatpush3.bf16.msra.mxu0 %v1396_v21 }
 0x104   : > { %1404 = vmatprep.subr.bf16.mxu0 %v1847_v0 }
 0x105   : > { %1356 = vmatmul.mubr.msk.f32.vlgmr.msra.gmra.mrb[2].mxu1 %vm553_vm1, %v792_v22 }
 0x106   : > { %1412 = vmatpush3.bf16.msra.mxu1 %v1393_v18  ;;  %1377 = vmatprep.mubr.msk.f32.mxu1 %vm1848_vm0, %v1849_v1 }
 0x107   : > { %1413 = vmatprep.subr.bf16.mxu1 %v1847_v0 }
 0x10a   : > { %1415 = vmatpush3.bf16.msra.mxu1 %v1396_v21 }
 0x1cf   : > { %v623_v23 = vpop.f32.mrb[0].mxu0 }
 0x1d0   : > { %v696_v25 = vpop.f32.mrb[0].mxu1  ;;  %v1324_v26 = vpop.f32.mrb[1].mxu0 }
 0x1d1   : > { %v697_v27 = vadd.f32 %v696_v25, %v623_v23  ;;  %v1335_v28 = vpop.f32.mrb[1].mxu1 }
 0x1d3   : > { %v706_v29 = vadd.f32 %v1272_v24, %v697_v27 }
 0x1d5   : > { %v707_v30 = vmul.f32 0.01, %v706_v29 }
 0x1d7   : > { %v708_v31 = vmax.f32 %v706_v29, %v707_v30 }
 0x1d8   : > { %v862_v33 = vpop.f32.mrb[2].mxu1 }
 0x1d9   : > { %1345 = vmatmul.mubr.msk.f32.vlgmr.msra.gmra.mrb[2].mxu0 %vm553_vm1, %v708_v31  ;;  %v1357_v34 = vpop.f32.mrb[3].mxu1 }
 0x1da   : > { %1406 = vmatpush3.bf16.msra.mxu0 %v1387_v9  ;;  %1366 = vmatprep.mubr.msk.f32.mxu0 %vm1848_vm0, %v1849_v1 }
 0x1db   : > { %1407 = vmatprep.subr.bf16.mxu0 %v1847_v0 }
 0x1de   : > { %1409 = vmatpush3.bf16.msra.mxu0 %v1390_v13 }
 0x1e1   : > { %1367 = vmatmul.mubr.msk.f32.vlgmr.msra.gmra.mrb[4].mxu0 %vm553_vm1, %v791_v32 }
 0x2ac   : > { %v784_v36 = vpop.f32.mrb[2].mxu0 }
 0x2ad   : > { %v785_v37 = vadd.f32 %v1273_v35, %v784_v36  ;;  %v1346_v38 = vpop.f32.mrb[3].mxu0 }
 0x2af   : > { %v788_v39 = vmul.f32 0.01, %v785_v37 }
 0x2b1   : > { %v789_v40 = vmax.f32 %v785_v37, %v788_v39 }
 0x2b3   : > { %790 = vst.msk [vmem:[%s529_s25] sm:$0xff] %vm553_vm1, %v789_v40 }
 0x2b4   : > { %v935_v41 = vpop.f32.mrb[4].mxu0 }
 0x2b5   : > { %v936_v42 = vadd.f32 %v935_v41, %v862_v33  ;;  %v1368_v43 = vpop.f32.mrb[5].mxu0 }
 0x2b7   : > { %v939_v44 = vadd.f32 %v1272_v24, %v936_v42 }
 0x2b9   : > { %v940_v45 = vmul.f32 0.01, %v939_v44 }
 0x2bb   : > { %v941_v46 = vmax.f32 %v939_v44, %v940_v45 }
 0x2bd   : > { %1378 = vmatmul.mubr.msk.f32.vlgmr.msra.gmra.mrb[4].mxu1 %vm553_vm1, %v941_v46 }
 0x2be   : > { %1735 = shalt.err (!%p1732_p5)
}
 0x2bf   : > { %s1736_s20 = scalar_lea.hbm %s2273_s9, 128  ;;  %s1740_s28 = scalar_lea.hbm %s2410_s18, 256 }
 0x2c0   : > { %p1737_p6 = scmp.ne.s32.totalorder %s2273_s9, %s1736_s20  ;;  %p1741_p4 = scmp.lt.u32.totalorder %s2273_s9, %s2410_s18 }
 0x2c1   : > { %p1742_p0 = scmp.lt.u32.totalorder %s1740_s28, %s1736_s20  ;;  %p1744_p7 = scmp.lt.u32.totalorder %s1736_s20, %s2273_s9 }
 0x2c2   : > { %p1738_p2 = pnand %p1737_p6, %p2411_p11 }
 0x2c3   : > { %p1743_p8 = por %p1742_p0, %p1741_p4 }
 0x2c4   : > { %p1739_p12 = pneg %p1738_p2 }
 0x2c5   : > { %p1745_p10 = por %p1744_p7, %p1743_p8 }
 0x2c7   : > { %p1746_p1 = pnand %p1745_p10, %p1739_p12 }
 0x2c9   : > { %1749 = shalt.err (!%p1746_p1)
}
 0x2ca   : > { %1436 = dma.vmem_to_hbm [thread:$0]  (%p2411_p11), %s1038_s22, 128, %s2273_s9, %s1019_s30  }
 0x2cb   : > { %s536_s25 = scalar_lea.vmem [#allocation15], %s2199_s4  ;;  %s2412_s23 = sld [smem:[#allocation32_spill]] }
 0x2cc   : > { %s1050_s26 = sshll.u32 %s536_s25, 4  ;;  %s1024_s9 = scalar_lea.sflag [#allocation16], %s2196_s5  ;;  %s2301_s26 = int_to_ptr.vmem [resolvable:$true] %s1050_s26 }
 0x2cd   : > { %s1750_s22 = scalar_lea.vmem %s2301_s26, 128  ;;  %s1851_s4 = smov [#allocation15]  }
 0x2ce   : > { %p1751_p13 = scmp.ne.s32.totalorder %s2301_s26, %s1750_s22  ;;  %s1754_s17 = sshll.u32 %s1851_s4, 4  ;;  %s1755_s17 = int_to_ptr.vmem [resolvable:$false] %s1754_s17 }
 0x2cf   : > { %s1756_s30 = scalar_lea.vmem %s1755_s17, 256  ;;  %p1757_p5 = scmp.lt.s32.totalorder %s2301_s26, %s1755_s17 }
 0x2d0   : > { %p1752_p9 = pnand %p1751_p13, %p2411_p11  ;;  %p1758_p6 = scmp.lt.s32.totalorder %s1756_s30, %s1750_s22 }
 0x2d1   : > { %s2299_s12 = scalar_lea.hbm %s2412_s23, %s1280_s10 }
 0x2d2   : > { %p1753_p3 = pneg %p1752_p9  ;;  %p1759_p2 = por %p1758_p6, %p1757_p5 }
 0x2d4   : > { %p1760_p12 = pnand %p1759_p2, %p1753_p3 }
 0x390   : > { %v1011_v47 = vpop.f32.mrb[4].mxu1 }
 0x391   : > { %v1012_v48 = vadd.f32 %v1273_v35, %v1011_v47  ;;  %v1379_v49 = vpop.f32.mrb[5].mxu1 }
 0x393   : > { %v1015_v50 = vmul.f32 0.01, %v1012_v48 }
 0x395   : > { %v1016_v51 = vmax.f32 %v1012_v48, %v1015_v50 }
 0x397   : > { %1017 = vst.msk [vmem:[%s536_s25] sm:$0xff] %vm553_vm1, %v1016_v51 }
 0x398   : > { %1763 = shalt.err (!%p1760_p12)
}
 0x399   : > { %s1764_s5 = scalar_lea.hbm %s2299_s12, 128  ;;  %s1768_s20 = scalar_lea.hbm %s2412_s23, 256 }
 0x39a   : > { %p1765_p4 = scmp.ne.s32.totalorder %s2299_s12, %s1764_s5  ;;  %p1769_p7 = scmp.lt.u32.totalorder %s2299_s12, %s2412_s23 }
 0x39b   : > { %p1770_p10 = scmp.lt.u32.totalorder %s1768_s20, %s1764_s5  ;;  %p1772_p13 = scmp.lt.u32.totalorder %s1764_s5, %s2299_s12 }
 0x39c   : > { %p1766_p0 = pnand %p1765_p4, %p2411_p11 }
 0x39d   : > { %p1771_p1 = por %p1770_p10, %p1769_p7 }
 0x39e   : > { %p1767_p8 = pneg %p1766_p0 }
 0x39f   : > { %p1773_p9 = por %p1772_p13, %p1771_p1 }
 0x3a1   : > { %p1774_p3 = pnand %p1773_p9, %p1767_p8 }
 0x3a3   : > { %1777 = shalt.err (!%p1774_p3)
}
 0x3a4   : > { %1437 = dma.vmem_to_hbm [thread:$0]  (%p2411_p11), %s2301_s26, 128, %s2299_s12, %s1024_s9  }
 0x3a5 PF: > { %s2413_s28 = sld [smem:[#allocation24_spill]]  ;;  %s2414_s1 = sld [smem:[#allocation25_spill]] }
 0x3a6   : > { %p2416_p6 = scmp.ge.s32.totalorder %s1836_s16, 2 }
 0x3ab   : > { %s1062_s29 = sand.u32 1, %s2413_s28   ;;  %p2415_p5 = scmp.ne.s32.totalorder %s2414_s1, 0 }
 0x3ac   : > { %s1063_s25 = scalar_lea.sflag [#allocation4], %s1062_s29 }
 0x3ad   : > { %p1464_p2 = pnand %p2416_p6, %p2415_p5 }
 0x3af   : > { %1815 = dma.done.wait (!%p1464_p2), %s1063_s25, 128  }
 0x3b0   : > { %1817 = vsyncadd (!%p1464_p2), %s1063_s25, 4294967168  ;;  %s1072_s27 = scalar_lea.sflag [#allocation16], %s1062_s29 }
 0x3b1   : > { %1819 = dma.done.wait (!%p1464_p2), %s1072_s27, 128  }
 0x3b2   : > { %1821 = vsyncadd (!%p1464_p2), %s1072_s27, 4294967168  ;;  %s2417_s16 = sld [smem:[#allocation26_spill]]  ;;  %s2418_s11 = sld [smem:[#allocation27_spill]] }
 0x3b3   : > { %s2419_s13 = smov %s1828_s14  ;;  %s2420_s14 = smov %s1832_s15 }
 0x3b8   : > { %p34_p11 = scmp.ge.s32.totalorder %s2417_s16, 4   ;;  %s2421_s15 = smov %s2418_s11 }
 0x3ba   :  { %36 = sbr.rel (!%p34_p11) target bundleno = 18 (0x12), region = 167 }
 0x3c1   :  { %1077 = vsyncpa [#allocation3], 1 }
 0x3c2   :  { %1079 = vsyncpa [#allocation3 + $0x1], 1 }
 0x3c3   :  { %1080 = vsyncpa [#allocation6], 1 }
 0x3c4   :  { %1082 = vsyncpa [#allocation6 + $0x1], 1 }
 0x3c5   :  { %1083 = vsyncpa [#allocation9], 1 }
 0x3c6   :  { %1085 = vsyncpa [#allocation9 + $0x1], 1 }
 0x3c7   :  { %1086 = vsyncpa [#allocation12], 1 }
 0x3c8   :  { %1087 = vsyncpa [#allocation4], 1 }
 0x3c9   :  { %1089 = vsyncpa [#allocation4 + $0x1], 1 }
 0x3ca   :  { %1090 = vsyncpa [#allocation16], 1 }
 0x3cb   :  { %1092 = vsyncpa [#allocation16 + $0x1], 1 }

</bundles_post_ra>
